<compile_context>
chip_gen: v6e
topology: v6e:2x2x1
jax: 0.10.0
libtpu: 0.0.40
codegen_flags: <defaults>
</compile_context>

<pallas_src>
import jax
import jax.numpy as jnp
from jax.experimental import pallas as pl
from jax.experimental.pallas import tpu as pltpu


def surrogate_cnn_kernel(x_ref, wconv_ref, bconv_ref, wh_ref, bh_ref,
                         wj_ref, bj_ref, out_ref):
    """One L-tile: conv taps via XLU rolls + VPU MACs, hidden layers on the
    MXU in (H, TL) layout, join as a VPU multiply + sublane reduce."""
    K = wconv_ref.shape[0]
    H = wconv_ref.shape[1]
    TL = out_ref.shape[-1]
    W = x_ref.shape[-1]                       # TL + lane-aligned halo

    x_row = x_ref[0]                          # (1, W)

    # Conv1d(in=1, out=H, kernel=K, padding=K//2): z[h,t] = sum_k Wc[h,k]*x[t+k].
    # Tap k is a left-rotate of the halo'd row (XLU); MAC on the VPU; then crop
    # the lane-aligned first TL columns (wrapped/halo lanes land in [TL, W)).
    acc = jnp.zeros((H, W), jnp.float32) + bconv_ref[...]          # (H, W)
    for k in range(K):                        # K small & static -> unrolled
        tap = x_row if k == 0 else pltpu.roll(x_row, shift=W - k, axis=1)
        acc = acc + wconv_ref[k] * tap        # (H,1) * (1,W) -> (H,W)
    z = acc[:, :TL]                           # (H, TL)

    # Hidden [Linear(H,H) + ReLU] stack, (H, L) layout: z <- relu(W @ z + b).
    # (dropout=None in create_linear_layer, so no dropout.)
    for i in range(wh_ref.shape[0]):          # static trip count -> unrolled
        z = jnp.dot(wh_ref[i], z, preferred_element_type=jnp.float32) + bh_ref[i]
        z = jnp.maximum(z, 0.0)

    # linear_join(H -> 1) off the MXU: VPU multiply + sublane reduce.
    # The SurrogateChannel scalar bias is pre-folded into bj by the wrapper.
    y = jnp.sum(wj_ref[...] * z, axis=0, keepdims=True) + bj_ref[...]   # (1, TL)
    out_ref[0] = y.astype(out_ref.dtype)


def _round_up(n, m):
    return ((n + m - 1) // m) * m


def surrogate_cnn_forward(x, params, n_lags, tile_l=1024):
    """x: (L,) float32.  Returns y: (L,) float32 == CNN(x) + surrogate bias."""
    wconv, bconv, wh, bh, wj, bj, bias = params
    L = int(x.shape[0])
    K = int(n_lags)
    H = int(wconv.shape[0])
    NL = int(wh.shape[0])
    pad = K // 2

    # L-tile on the lane axis: multiple of 128, capped for tiny signals.
    TL = max(128, _round_up(min(int(tile_l), _round_up(L, 128)), 128))
    num_tiles = (L + TL - 1) // TL
    L_total = num_tiles * TL

    # Lane-aligned halo covering the K-1 'same'-padding taps on the right.
    halo = max(128, _round_up(2 * pad, 128))
    W = TL + halo

    # Zero-padded signal, then per-tile overlapping windows (tile + halo).
    x_big = jnp.concatenate([
        jnp.zeros((pad,), jnp.float32),
        x.astype(jnp.float32),
        jnp.zeros((L_total + halo - pad - L,), jnp.float32),
    ])
    starts = jnp.arange(num_tiles) * TL
    x_tiles = jax.vmap(
        lambda s: jax.lax.dynamic_slice(x_big, (s,), (W,)))(starts)
    x_tiles = x_tiles[:, None, :]                               # (nt, 1, W)

    # Kernel-side parameter layouts (f32, (H, L)-layout friendly).
    wconv_k = jnp.transpose(wconv.astype(jnp.float32))[:, :, None]  # (K, H, 1)
    bconv_k = bconv.astype(jnp.float32)                             # (H, 1)
    wh_k = wh.astype(jnp.float32)                                   # (NL, H, H)
    bh_k = bh.astype(jnp.float32)                                   # (NL, H, 1)
    wj_k = jnp.transpose(wj.astype(jnp.float32))                    # (H, 1)
    bj_k = (bj + bias).astype(jnp.float32)                          # (1, 1)

    flops = 2 * L_total * (K * H + NL * H * H + H)
    bytes_accessed = 4 * (num_tiles * W + L_total
                          + K * H + H + NL * H * H + NL * H + H + 1)

    out = pl.pallas_call(
        surrogate_cnn_kernel,
        out_shape=jax.ShapeDtypeStruct((num_tiles, 1, TL), jnp.float32),
        grid=(num_tiles,),
        in_specs=[
            pl.BlockSpec((1, 1, W), lambda i: (i, 0, 0)),     # x tile + halo
            pl.BlockSpec((K, H, 1), lambda i: (0, 0, 0)),     # conv taps
            pl.BlockSpec((H, 1), lambda i: (0, 0)),           # conv bias
            pl.BlockSpec((NL, H, H), lambda i: (0, 0, 0)),    # hidden weights
            pl.BlockSpec((NL, H, 1), lambda i: (0, 0, 0)),    # hidden biases
            pl.BlockSpec((H, 1), lambda i: (0, 0)),           # join weight
            pl.BlockSpec((1, 1), lambda i: (0, 0)),           # join + surrogate bias
        ],
        out_specs=pl.BlockSpec((1, 1, TL), lambda i: (i, 0, 0)),
        compiler_params=pltpu.CompilerParams(
            dimension_semantics=("parallel",),
            vmem_limit_bytes=32 * 1024 * 1024),
        cost_estimate=pl.CostEstimate(
            flops=flops, transcendentals=0, bytes_accessed=bytes_accessed),
    )(x_tiles, wconv_k, bconv_k, wh_k, bh_k, wj_k, bj_k)

    return out.reshape(-1)[:L]


def init_params(key, n_lags, n_hidden_units, n_hidden_layers):
    """PyTorch-style uniform(-1/sqrt(fan_in), 1/sqrt(fan_in)) init.
    Weights use the torch Linear convention (out_features, in_features)."""
    K, H, NL = n_lags, n_hidden_units, n_hidden_layers
    ks = jax.random.split(key, 7)

    bc = 1.0 / jnp.sqrt(jnp.float32(K))          # Conv1d fan_in = 1 * K
    wconv = jax.random.uniform(ks[0], (H, K), jnp.float32, -bc, bc)
    bconv = jax.random.uniform(ks[1], (H, 1), jnp.float32, -bc, bc)

    bl = 1.0 / jnp.sqrt(jnp.float32(H))          # Linear fan_in = H
    wh = jax.random.uniform(ks[2], (NL, H, H), jnp.float32, -bl, bl)
    bh = jax.random.uniform(ks[3], (NL, H, 1), jnp.float32, -bl, bl)

    wj = jax.random.uniform(ks[4], (1, H), jnp.float32, -bl, bl)
    bj = jax.random.uniform(ks[5], (1, 1), jnp.float32, -bl, bl)

    # SurrogateChannel.bias (torch inits it to 0.0; a nonzero value is used
    # here so the bias wiring is exercised by the correctness check).
    bias = jax.random.uniform(ks[6], (), jnp.float32, -0.5, 0.5)
    return (wconv, bconv, wh, bh, wj, bj, bias)


def surrogate_cnn_forward_ref(x, params, n_lags):
    """Plain-JAX reference replicating the torch forward exactly."""
    wconv, bconv, wh, bh, wj, bj, bias = params
    L, K = x.shape[0], n_lags
    pad = K // 2
    x_pad = jnp.pad(x, (pad, pad))
    x_col = jnp.stack([x_pad[k:k + L] for k in range(K)], axis=1)   # (L, K)
    z = x_col @ wconv.T + bconv[:, 0]                               # (L, H)
    for i in range(wh.shape[0]):
        z = jnp.maximum(z @ wh[i].T + bh[i, :, 0], 0.0)
    y = z @ wj[0] + bj[0, 0]
    return y + bias


if __name__ == "__main__":
    # Module hyperparameters implied by CNN.__init__ (n_lags must be odd).
    n_lags = 5
    n_hidden_units = 32
    n_hidden_layers = 2

    key = jax.random.PRNGKey(0)
    k_x1, k_x2, k_p = jax.random.split(key, 3)
    params = init_params(k_p, n_lags, n_hidden_units, n_hidden_layers)

    # Case 1: tiny signal (single 128-wide L-tile).
    x_small = jax.random.normal(k_x1, (16,), jnp.float32)
    y_small = jax.block_until_ready(
        surrogate_cnn_forward(x_small, params, n_lags))
    y_small_ref = surrogate_cnn_forward_ref(x_small, params, n_lags)
    assert y_small.shape == (16,)
    assert jnp.allclose(y_small, y_small_ref, atol=1e-5, rtol=1e-5), (
        y_small, y_small_ref)

    # Case 2: signal spanning several L-tiles (exercises halo + parallel grid).
    x_multi = jax.random.normal(k_x2, (300,), jnp.float32)
    y_multi = jax.block_until_ready(
        surrogate_cnn_forward(x_multi, params, n_lags, tile_l=128))
    y_multi_ref = surrogate_cnn_forward_ref(x_multi, params, n_lags)
    assert y_multi.shape == (300,)
    assert jnp.allclose(y_multi, y_multi_ref, atol=1e-5, rtol=1e-5), (
        y_multi, y_multi_ref)

    print("KERNEL_OK")
</pallas_src>

<mosaic_0001>
module attributes {stable_mosaic.version = 11 : i64} {
  func.func @surrogate_cnn_kernel(%arg0: i32, %arg1: memref<1x1x256xf32, #tpu.memory_space<vmem>>, %arg2: memref<5x32x1xf32, #tpu.memory_space<vmem>>, %arg3: memref<32x1xf32, #tpu.memory_space<vmem>>, %arg4: memref<2x32x32xf32, #tpu.memory_space<vmem>>, %arg5: memref<2x32x1xf32, #tpu.memory_space<vmem>>, %arg6: memref<32x1xf32, #tpu.memory_space<vmem>>, %arg7: memref<1x1xf32, #tpu.memory_space<vmem>>, %arg8: memref<1x1x128xf32, #tpu.memory_space<vmem>>) attributes {dimension_semantics = [#tpu.dimension_semantics<parallel>], iteration_bounds = array<i64: 1>, scalar_prefetch = 0 : i64, scratch_operands = 0 : i64, tpu.core_type = #tpu.core_type<tc>, window_params = [{transform_indices = @transform_0, window_bounds = array<i64: 1, 1, 256>}, {pipeline_mode = #tpu.pipeline_mode<synchronous>, transform_indices = @transform_1, window_bounds = array<i64: 5, 32, 1>}, {pipeline_mode = #tpu.pipeline_mode<synchronous>, transform_indices = @transform_2, window_bounds = array<i64: 32, 1>}, {pipeline_mode = #tpu.pipeline_mode<synchronous>, transform_indices = @transform_3, window_bounds = array<i64: 2, 32, 32>}, {pipeline_mode = #tpu.pipeline_mode<synchronous>, transform_indices = @transform_4, window_bounds = array<i64: 2, 32, 1>}, {pipeline_mode = #tpu.pipeline_mode<synchronous>, transform_indices = @transform_5, window_bounds = array<i64: 32, 1>}, {pipeline_mode = #tpu.pipeline_mode<synchronous>, transform_indices = @transform_6, window_bounds = array<i64: 1, 1>}, {transform_indices = @transform_7, window_bounds = array<i64: 1, 1, 128>}]} {
    %c0 = arith.constant 0 : index
    %c0_0 = arith.constant 0 : index
    %c0_1 = arith.constant 0 : index
    %0 = vector.load %arg1[%c0, %c0_0, %c0_1] : memref<1x1x256xf32, #tpu.memory_space<vmem>>, vector<1x1x256xf32>
    %1 = vector.shape_cast %0 : vector<1x1x256xf32> to vector<1x256xf32>
    %cst = arith.constant 0.000000e+00 : f32
    %2 = vector.broadcast %cst : f32 to vector<32x256xf32>
    %c0_2 = arith.constant 0 : index
    %c0_3 = arith.constant 0 : index
    %3 = vector.load %arg3[%c0_2, %c0_3] : memref<32x1xf32, #tpu.memory_space<vmem>>, vector<32x1xf32>
    %4 = vector.broadcast %3 : vector<32x1xf32> to vector<32x256xf32>
    %5 = arith.addf %2, %4 : vector<32x256xf32>
    %c0_4 = arith.constant 0 : index
    %c0_5 = arith.constant 0 : index
    %c0_6 = arith.constant 0 : index
    %6 = vector.load %arg2[%c0_4, %c0_5, %c0_6] : memref<5x32x1xf32, #tpu.memory_space<vmem>>, vector<1x32x1xf32>
    %7 = vector.shape_cast %6 : vector<1x32x1xf32> to vector<32x1xf32>
    %8 = vector.broadcast %7 : vector<32x1xf32> to vector<32x256xf32>
    %9 = vector.broadcast %1 : vector<1x256xf32> to vector<32x256xf32>
    %10 = arith.mulf %8, %9 : vector<32x256xf32>
    %11 = arith.addf %5, %10 : vector<32x256xf32>
    %c255_i32 = arith.constant 255 : i32
    %12 = tpu.dynamic_rotate %1 by %c255_i32 dim 1 : vector<1x256xf32>, i32 -> vector<1x256xf32>
    %c1 = arith.constant 1 : index
    %c0_7 = arith.constant 0 : index
    %c0_8 = arith.constant 0 : index
    %13 = vector.load %arg2[%c1, %c0_7, %c0_8] : memref<5x32x1xf32, #tpu.memory_space<vmem>>, vector<1x32x1xf32>
    %14 = vector.shape_cast %13 : vector<1x32x1xf32> to vector<32x1xf32>
    %15 = vector.broadcast %14 : vector<32x1xf32> to vector<32x256xf32>
    %16 = vector.broadcast %12 : vector<1x256xf32> to vector<32x256xf32>
    %17 = arith.mulf %15, %16 : vector<32x256xf32>
    %18 = arith.addf %11, %17 : vector<32x256xf32>
    %c254_i32 = arith.constant 254 : i32
    %19 = tpu.dynamic_rotate %1 by %c254_i32 dim 1 : vector<1x256xf32>, i32 -> vector<1x256xf32>
    %c2 = arith.constant 2 : index
    %c0_9 = arith.constant 0 : index
    %c0_10 = arith.constant 0 : index
    %20 = vector.load %arg2[%c2, %c0_9, %c0_10] : memref<5x32x1xf32, #tpu.memory_space<vmem>>, vector<1x32x1xf32>
    %21 = vector.shape_cast %20 : vector<1x32x1xf32> to vector<32x1xf32>
    %22 = vector.broadcast %21 : vector<32x1xf32> to vector<32x256xf32>
    %23 = vector.broadcast %19 : vector<1x256xf32> to vector<32x256xf32>
    %24 = arith.mulf %22, %23 : vector<32x256xf32>
    %25 = arith.addf %18, %24 : vector<32x256xf32>
    %c253_i32 = arith.constant 253 : i32
    %26 = tpu.dynamic_rotate %1 by %c253_i32 dim 1 : vector<1x256xf32>, i32 -> vector<1x256xf32>
    %c3 = arith.constant 3 : index
    %c0_11 = arith.constant 0 : index
    %c0_12 = arith.constant 0 : index
    %27 = vector.load %arg2[%c3, %c0_11, %c0_12] : memref<5x32x1xf32, #tpu.memory_space<vmem>>, vector<1x32x1xf32>
    %28 = vector.shape_cast %27 : vector<1x32x1xf32> to vector<32x1xf32>
    %29 = vector.broadcast %28 : vector<32x1xf32> to vector<32x256xf32>
    %30 = vector.broadcast %26 : vector<1x256xf32> to vector<32x256xf32>
    %31 = arith.mulf %29, %30 : vector<32x256xf32>
    %32 = arith.addf %25, %31 : vector<32x256xf32>
    %c252_i32 = arith.constant 252 : i32
    %33 = tpu.dynamic_rotate %1 by %c252_i32 dim 1 : vector<1x256xf32>, i32 -> vector<1x256xf32>
    %c4 = arith.constant 4 : index
    %c0_13 = arith.constant 0 : index
    %c0_14 = arith.constant 0 : index
    %34 = vector.load %arg2[%c4, %c0_13, %c0_14] : memref<5x32x1xf32, #tpu.memory_space<vmem>>, vector<1x32x1xf32>
    %35 = vector.shape_cast %34 : vector<1x32x1xf32> to vector<32x1xf32>
    %36 = vector.broadcast %35 : vector<32x1xf32> to vector<32x256xf32>
    %37 = vector.broadcast %33 : vector<1x256xf32> to vector<32x256xf32>
    %38 = arith.mulf %36, %37 : vector<32x256xf32>
    %39 = arith.addf %32, %38 : vector<32x256xf32>
    %40 = vector.extract_strided_slice %39 {offsets = [0, 0], sizes = [32, 128], strides = [1, 1]} : vector<32x256xf32> to vector<32x128xf32>
    %c0_15 = arith.constant 0 : index
    %c0_16 = arith.constant 0 : index
    %c0_17 = arith.constant 0 : index
    %41 = vector.load %arg4[%c0_15, %c0_16, %c0_17] : memref<2x32x32xf32, #tpu.memory_space<vmem>>, vector<1x32x32xf32>
    %42 = vector.shape_cast %41 : vector<1x32x32xf32> to vector<32x32xf32>
    %cst_18 = arith.constant dense<0.000000e+00> : vector<32x128xf32>
    %43 = tpu.matmul %42, %40, %cst_18 {dimension_numbers = #tpu.dot_dimension_numbers<[1], [0], [0], [1], [0, 0, 1, 1], [], []>} : vector<32x32xf32>, vector<32x128xf32>, vector<32x128xf32> -> vector<32x128xf32>
    %c0_19 = arith.constant 0 : index
    %c0_20 = arith.constant 0 : index
    %c0_21 = arith.constant 0 : index
    %44 = vector.load %arg5[%c0_19, %c0_20, %c0_21] : memref<2x32x1xf32, #tpu.memory_space<vmem>>, vector<1x32x1xf32>
    %45 = vector.shape_cast %44 : vector<1x32x1xf32> to vector<32x1xf32>
    %46 = vector.broadcast %45 : vector<32x1xf32> to vector<32x128xf32>
    %47 = arith.addf %43, %46 : vector<32x128xf32>
    %cst_22 = arith.constant 0.000000e+00 : f32
    %48 = vector.broadcast %cst_22 : f32 to vector<32x128xf32>
    %49 = arith.maximumf %47, %48 : vector<32x128xf32>
    %c1_23 = arith.constant 1 : index
    %c0_24 = arith.constant 0 : index
    %c0_25 = arith.constant 0 : index
    %50 = vector.load %arg4[%c1_23, %c0_24, %c0_25] : memref<2x32x32xf32, #tpu.memory_space<vmem>>, vector<1x32x32xf32>
    %51 = vector.shape_cast %50 : vector<1x32x32xf32> to vector<32x32xf32>
    %cst_26 = arith.constant dense<0.000000e+00> : vector<32x128xf32>
    %52 = tpu.matmul %51, %49, %cst_26 {dimension_numbers = #tpu.dot_dimension_numbers<[1], [0], [0], [1], [0, 0, 1, 1], [], []>} : vector<32x32xf32>, vector<32x128xf32>, vector<32x128xf32> -> vector<32x128xf32>
    %c1_27 = arith.constant 1 : index
    %c0_28 = arith.constant 0 : index
    %c0_29 = arith.constant 0 : index
    %53 = vector.load %arg5[%c1_27, %c0_28, %c0_29] : memref<2x32x1xf32, #tpu.memory_space<vmem>>, vector<1x32x1xf32>
    %54 = vector.shape_cast %53 : vector<1x32x1xf32> to vector<32x1xf32>
    %55 = vector.broadcast %54 : vector<32x1xf32> to vector<32x128xf32>
    %56 = arith.addf %52, %55 : vector<32x128xf32>
    %cst_30 = arith.constant 0.000000e+00 : f32
    %57 = vector.broadcast %cst_30 : f32 to vector<32x128xf32>
    %58 = arith.maximumf %56, %57 : vector<32x128xf32>
    %c0_31 = arith.constant 0 : index
    %c0_32 = arith.constant 0 : index
    %59 = vector.load %arg6[%c0_31, %c0_32] : memref<32x1xf32, #tpu.memory_space<vmem>>, vector<32x1xf32>
    %60 = vector.broadcast %59 : vector<32x1xf32> to vector<32x128xf32>
    %61 = arith.mulf %60, %58 : vector<32x128xf32>
    %cst_33 = arith.constant dense<0.000000e+00> : vector<128xf32>
    %62 = vector.multi_reduction <add>, %61, %cst_33 [0] : vector<32x128xf32> to vector<128xf32>
    %63 = vector.shape_cast %62 : vector<128xf32> to vector<1x128xf32>
    %c0_34 = arith.constant 0 : index
    %c0_35 = arith.constant 0 : index
    %64 = vector.load %arg7[%c0_34, %c0_35] : memref<1x1xf32, #tpu.memory_space<vmem>>, vector<1x1xf32>
    %65 = vector.broadcast %64 : vector<1x1xf32> to vector<1x128xf32>
    %66 = arith.addf %63, %65 : vector<1x128xf32>
    %c0_36 = arith.constant 0 : index
    %c0_37 = arith.constant 0 : index
    %c0_38 = arith.constant 0 : index
    %67 = vector.load %arg8[%c0_36, %c0_37, %c0_38] : memref<1x1x128xf32, #tpu.memory_space<vmem>>, vector<1x1x128xf32>
    %68 = vector.shape_cast %67 : vector<1x1x128xf32> to vector<1x128xf32>
    %69 = vector.shape_cast %66 : vector<1x128xf32> to vector<1x1x128xf32>
    tpu.vector_store %arg8[%c0_36, %c0_37, %c0_38], %69 {strides = array<i32>} : memref<1x1x128xf32, #tpu.memory_space<vmem>>, vector<1x1x128xf32>,
    return
  }
  func.func @transform_0(%arg0: i32) -> (i32, i32, i32) {
    %c0_i32 = arith.constant 0 : i32
    %c0_i32_0 = arith.constant 0 : i32
    %c0_i32_1 = arith.constant 0 : i32
    return %arg0, %c0_i32, %c0_i32_0 : i32, i32, i32
  }
  func.func @transform_1(%arg0: i32) -> (i32, i32, i32) {
    %c0_i32 = arith.constant 0 : i32
    %c0_i32_0 = arith.constant 0 : i32
    %c0_i32_1 = arith.constant 0 : i32
    %c0_i32_2 = arith.constant 0 : i32
    return %c0_i32, %c0_i32_0, %c0_i32_1 : i32, i32, i32
  }
  func.func @transform_2(%arg0: i32) -> (i32, i32) {
    %c0_i32 = arith.constant 0 : i32
    %c0_i32_0 = arith.constant 0 : i32
    %c0_i32_1 = arith.constant 0 : i32
    return %c0_i32, %c0_i32_0 : i32, i32
  }
  func.func @transform_3(%arg0: i32) -> (i32, i32, i32) {
    %c0_i32 = arith.constant 0 : i32
    %c0_i32_0 = arith.constant 0 : i32
    %c0_i32_1 = arith.constant 0 : i32
    %c0_i32_2 = arith.constant 0 : i32
    return %c0_i32, %c0_i32_0, %c0_i32_1 : i32, i32, i32
  }
  func.func @transform_4(%arg0: i32) -> (i32, i32, i32) {
    %c0_i32 = arith.constant 0 : i32
    %c0_i32_0 = arith.constant 0 : i32
    %c0_i32_1 = arith.constant 0 : i32
    %c0_i32_2 = arith.constant 0 : i32
    return %c0_i32, %c0_i32_0, %c0_i32_1 : i32, i32, i32
  }
  func.func @transform_5(%arg0: i32) -> (i32, i32) {
    %c0_i32 = arith.constant 0 : i32
    %c0_i32_0 = arith.constant 0 : i32
    %c0_i32_1 = arith.constant 0 : i32
    return %c0_i32, %c0_i32_0 : i32, i32
  }
  func.func @transform_6(%arg0: i32) -> (i32, i32) {
    %c0_i32 = arith.constant 0 : i32
    %c0_i32_0 = arith.constant 0 : i32
    %c0_i32_1 = arith.constant 0 : i32
    return %c0_i32, %c0_i32_0 : i32, i32
  }
  func.func @transform_7(%arg0: i32) -> (i32, i32, i32) {
    %c0_i32 = arith.constant 0 : i32
    %c0_i32_0 = arith.constant 0 : i32
    %c0_i32_1 = arith.constant 0 : i32
    return %arg0, %c0_i32, %c0_i32_0 : i32, i32, i32
  }
}

</mosaic_0001>

<bundles_post_ra>
// kernel: tpu_custom_call.1
= control target key start
LH: loop header
LB: loop body
LE: loop exit
PB: predicated region body
PF: predicated region fallthrough
CT: control target
= control target key end

     0   :  { %s920_s0 = inlined_call_operand.vmem [shape: f32[1,1,256], index: 0, kind: input, shape index: {}]   ;;  %s921_s1 = inlined_call_operand.vmem [shape: f32[5,32,1], index: 1, kind: input, shape index: {}]   ;;  %s922_s2 = inlined_call_operand.vmem [shape: f32[32,1], index: 2, kind: input, shape index: {}]   ;;  %s923_s3 = inlined_call_operand.vmem [shape: f32[2,32,32], index: 3, kind: input, shape index: {}]   ;;  %s924_s4 = inlined_call_operand.vmem [shape: f32[2,32,1], index: 4, kind: input, shape index: {}]   ;;  %s925_s5 = inlined_call_operand.vmem [shape: f32[32,1], index: 5, kind: input, shape index: {}]   ;;  %s926_s6 = inlined_call_operand.<no memory space> [shape: f32[1,1], index: 6, kind: input, shape index: {}]   ;;  %s927_s7 = inlined_call_operand.hbm [shape: f32[1,1,128], index: 7, kind: output, shape index: {}]  }
   0x1   :  { %v12_v0 = vstv %s926_s6 }
   0x2   :  { %13 = vst [vmem:[#allocation2] sm:$0x1] %v12_v0 }
   0x3   :  { %v60_v1 = vld [vmem:[%s921_s1 + $0x10] sm:$0xff]  ;;  %v61_v2 = vld [vmem:[%s921_s1 + $0x18] sm:$0xff]  ;;  %v83_v3 = vlaneseq  ;;  %v705_v4 = vmov 0   ;;  %v59_v10 = vld [vmem:[%s921_s1 + $0x8] sm:$0xff] }
   0x4   :  { %682 = vset.pattern.permute.xlu1 %v705_v4  ;;  %681 = vset.pattern.permute.xlu0 %v705_v4  ;;  %v602_v6 = vld [vmem:[%s921_s1 + $0x38] sm:$0xff]  ;;  %v32_v11 = vld [vmem:[%s922_s2 + $0x10] sm:$0xff]  ;;  %v29_v12 = vld [vmem:[%s920_s0] sm:$0x3] }
   0x5   :  { %74 = vperm.xlu1 %682, %v60_v1   ;;  %79 = vperm.xlu0 %681, %v61_v2   ;;  %v84_v5 = vshrl.u32 %v83_v3, 7  ;;  %v33_v7 = vld [vmem:[%s922_s2 + $0x18] sm:$0xff] }
   0x7   :  { %v767_v8 = vsub.s32 0, %v84_v5  ;;  %v98_v9 = vsub.s32 1, %v84_v5 }
   0x9   :  { %131 = vperm.xlu1 %682, %v602_v6   ;;  %51 = vperm.xlu0 %681, %v33_v7   ;;  %v99_v13 = vrot.slane %v29_v12, %v98_v9  ;;  %v779_v14 = vrot.slane %v29_v12, %v767_v8 }
   0xd   :  { %69 = vperm.xlu1 %682, %v59_v10   ;;  %46 = vperm.xlu0 %681, %v32_v11  }
   0xe   :  { %14 = vsyncpa [#allocation4], 0  ;;  %s706_s16 = smov 127   ;;  %v606_v15 = vld [vmem:[%s921_s1 + $0x58] sm:$0xff]  ;;  %v601_v16 = vld [vmem:[%s921_s1 + $0x30] sm:$0xff]  ;;  %s707_s26 = smov 126  }
   0xf   :  { %v58_v17 = vld [vmem:[%s921_s1] sm:$0xff]  ;;  %v31_v18 = vld [vmem:[%s922_s2 + $0x8] sm:$0xff]  ;;  %v605_v20 = vld [vmem:[%s921_s1 + $0x50] sm:$0xff]  ;;  %s708_s13 = smov 125   ;;  %s709_s0 = smov 124   ;;  %vm303_vm0 = vcmask 261120  }
  0x10   :  { %v600_v19 = vld [vmem:[%s921_s1 + $0x28] sm:$0xff]  ;;  %v30_v21 = vld [vmem:[%s922_s2] sm:$0xff]  ;;  %v610_v22 = vld [vmem:[%s921_s1 + $0x78] sm:$0xff]  ;;  %v106_v1 = vand.u32 127, %v83_v3 }
  0x11   :  { %103 = vrot.lane.b32.xlu1 %v99_v13, %s706_s16  ;;  %101 = vrot.lane.b32.xlu0 %v779_v14, %s706_s16  ;;  %v604_v23 = vld [vmem:[%s921_s1 + $0x48] sm:$0xff]  ;;  %v599_v24 = vld [vmem:[%s921_s1 + $0x20] sm:$0xff] }
  0x12   :  { %v614_v25 = vld [vmem:[%s921_s1 + $0x98] sm:$0xff]  ;;  %v609_v26 = vld [vmem:[%s921_s1 + $0x70] sm:$0xff]  ;;  %v608_v27 = vld [vmem:[%s921_s1 + $0x68] sm:$0xff]  ;;  %vm107_vm1 = vcmp.lt.s32.totalorder %v106_v1, 127  ;;  %vm150_vm2 = vcmp.lt.s32.totalorder %v106_v1, 126  ;;  %vm193_vm3 = vcmp.lt.s32.totalorder %v106_v1, 125 }
  0x13   :  { %v603_v28 = vld [vmem:[%s921_s1 + $0x40] sm:$0xff]  ;;  %v613_v30 = vld [vmem:[%s921_s1 + $0x90] sm:$0xff]  ;;  %v612_v32 = vld [vmem:[%s921_s1 + $0x88] sm:$0xff]  ;;  %vm236_vm4 = vcmp.lt.s32.totalorder %v106_v1, 124 }
  0x14   :  { %v607_v29 = vld [vmem:[%s921_s1 + $0x60] sm:$0xff]  ;;  %v281_v33 = vld [vmem:[%s924_s4 + $0x10] sm:$0xff]  ;;  %v282_v34 = vld [vmem:[%s924_s4 + $0x18] sm:$0xff] }
  0x15   :  { %174 = vperm.xlu1 %682, %v606_v15   ;;  %126 = vperm.xlu0 %681, %v601_v16   ;;  %v611_v31 = vld [vmem:[%s921_s1 + $0x80] sm:$0xff]  ;;  %v280_v37 = vld [vmem:[%s924_s4 + $0x8] sm:$0xff]  ;;  %v626_v40 = vld [vmem:[%s924_s4 + $0x38] sm:$0xff] }
  0x16   :  { %v275_v35 = vld [vmem:[%s923_s3] sm:$0xff]  ;;  %v624_v38 = vld [vmem:[%s924_s4 + $0x28] sm:$0xff]  ;;  %v625_v41 = vld [vmem:[%s924_s4 + $0x30] sm:$0xff] }
  0x17   :  { %655 = vmatprep.mubr.msk.f32.mxu0 %vm303_vm0, %v275_v35  ;;  %v279_v36 = vld [vmem:[%s924_s4] sm:$0xff]  ;;  %v537_v42 = vld [vmem:[%s925_s5 + $0x8] sm:$0xff]  ;;  %v539_v44 = vld [vmem:[%s925_s5 + $0x18] sm:$0xff] }
  0x18   :  { %v623_v39 = vld [vmem:[%s924_s4 + $0x20] sm:$0xff]  ;;  %v538_v45 = vld [vmem:[%s925_s5 + $0x10] sm:$0xff]  ;;  %v276_v1 = vld [vmem:[%s923_s3 + $0x8] sm:$0xff] }
  0x19   :  { %64 = vperm.xlu1 %682, %v58_v17   ;;  %41 = vperm.xlu0 %681, %v31_v18   ;;  %v536_v43 = vld [vmem:[%s925_s5] sm:$0xff] }
  0x1a   :  { %v573_v46 = vld [vmem:[#allocation2] sm:$0x1] }
  0x1d   :  { %146 = vrot.lane.b32.xlu1 %v779_v14, %s707_s26  ;;  %121 = vperm.xlu0 %681, %v600_v19  }
  0x21   :  { %169 = vperm.xlu1 %682, %v605_v20   ;;  %148 = vrot.lane.b32.xlu0 %v99_v13, %s707_s26 }
  0x25   :  { %36 = vperm.xlu1 %682, %v30_v21   ;;  %217 = vperm.xlu0 %681, %v610_v22  }
  0x29   :  { %164 = vperm.xlu1 %682, %v604_v23   ;;  %116 = vperm.xlu0 %681, %v599_v24  }
  0x2d   :  { %191 = vrot.lane.b32.xlu1 %v99_v13, %s708_s13  ;;  %189 = vrot.lane.b32.xlu0 %v779_v14, %s708_s13 }
  0x31   :  { %260 = vperm.xlu1 %682, %v614_v25   ;;  %212 = vperm.xlu0 %681, %v609_v26  }
  0x35   :  { %207 = vperm.xlu1 %682, %v608_v27   ;;  %159 = vperm.xlu0 %681, %v603_v28  }
  0x39   :  { %234 = vrot.lane.b32.xlu1 %v99_v13, %s709_s0  ;;  %232 = vrot.lane.b32.xlu0 %v779_v14, %s709_s0 }
  0x3d   :  { %202 = vperm.xlu1 %682, %v607_v29   ;;  %255 = vperm.xlu0 %681, %v613_v30  }
  0x41   :  { %245 = vperm.xlu1 %682, %v611_v31   ;;  %250 = vperm.xlu0 %681, %v612_v32  }
  0x45   :  { %295 = vperm.xlu1 %682, %v281_v33   ;;  %300 = vperm.xlu0 %681, %v282_v34  }
  0x49   :  { %285 = vperm.xlu1 %682, %v279_v36   ;;  %290 = vperm.xlu0 %681, %v280_v37  }
  0x4d   :  { %422 = vperm.xlu1 %682, %v624_v38   ;;  %417 = vperm.xlu0 %681, %v623_v39  }
  0x51   :  { %432 = vperm.xlu1 %682, %v626_v40   ;;  %427 = vperm.xlu0 %681, %v625_v41  }
  0x55   :  { %547 = vperm.xlu1 %682, %v537_v42   ;;  %542 = vperm.xlu0 %681, %v536_v43  }
  0x59   :  { %557 = vperm.xlu1 %682, %v539_v44   ;;  %552 = vperm.xlu0 %681, %v538_v45  }
  0x5d   :  { %576 = vperm.xlu0 %681, %v573_v46  }
  0x80   :  { %v75_v47 = vpop.permute.xlu1 %74  ;;  %v80_v48 = vpop.permute.xlu0 %79 }
  0x81   :  { %v91_v16 = vmul.f32 %v779_v14, %v80_v48  ;;  %v90_v20 = vmul.f32 %v779_v14, %v75_v47 }
  0x84   :  { %v132_v49 = vpop.permute.xlu1 %131  ;;  %v52_v50 = vpop.permute.xlu0 %51 }
  0x85   :  { %v95_v22 = vadd.f32 %v91_v16, %v52_v50 }
  0x88   :  { %v70_v51 = vpop.permute.xlu1 %69  ;;  %v47_v52 = vpop.permute.xlu0 %46 }
  0x89   :  { %v94_v24 = vadd.f32 %v90_v20, %v47_v52  ;;  %v89_v26 = vmul.f32 %v779_v14, %v70_v51 }
  0x8c   :  { %v104_v53 = vpop.permute.xlu1 %103  ;;  %v102_v54 = vpop.permute.xlu0 %101 }
  0x8d   :  { %v108_v7 = vsel %vm107_vm1, %v102_v54, %v104_v53 }
  0x8e   :  { %v137_v10 = vrot.slane %v108_v7, %v767_v8 }
  0x90   :  { %v175_v55 = vpop.permute.xlu1 %174  ;;  %v127_v56 = vpop.permute.xlu0 %126  ;;  %v141_v19 = vmul.f32 %v137_v10, %v132_v49 }
  0x91   :  { %v140_v21 = vmul.f32 %v137_v10, %v127_v56 }
  0x92   :  { %v145_v30 = vadd.f32 %v141_v19, %v95_v22 }
  0x93   :  { %v144_v32 = vadd.f32 %v140_v21, %v94_v24  ;;  %v621_v24 = vld [vmem:[%s923_s3 + $0x30] sm:$0xff] }
  0x94   :  { %v65_v57 = vpop.permute.xlu1 %64  ;;  %v42_v58 = vpop.permute.xlu0 %41 }
  0x95   :  { %v88_v35 = vmul.f32 %v779_v14, %v65_v57  ;;  %v93_v36 = vadd.f32 %v89_v26, %v42_v58 }
  0x98   :  { %v147_v59 = vpop.permute.xlu1 %146  ;;  %v122_v60 = vpop.permute.xlu0 %121 }
  0x99   :  { %v139_v27 = vmul.f32 %v137_v10, %v122_v60 }
  0x9b   :  { %v143_v42 = vadd.f32 %v139_v27, %v93_v36 }
  0x9c   :  { %v170_v61 = vpop.permute.xlu1 %169  ;;  %v149_v62 = vpop.permute.xlu0 %148 }
  0x9d   :  { %v151_v9 = vsel %vm150_vm2, %v147_v59, %v149_v62 }
  0x9e   :  { %v180_v15 = vrot.slane %v151_v9, %v767_v8 }
  0xa0   :  { %v37_v63 = vpop.permute.xlu1 %36  ;;  %v218_v0 = vpop.permute.xlu0 %217  ;;  %v184_v23 = vmul.f32 %v180_v15, %v175_v55  ;;  %v183_v25 = vmul.f32 %v180_v15, %v170_v61 }
  0xa1   :  { %v92_v43 = vadd.f32 %v88_v35, %v37_v63 }
  0xa2   :  { %v188_v38 = vadd.f32 %v184_v23, %v145_v30  ;;  %v187_v41 = vadd.f32 %v183_v25, %v144_v32  ;;  %v620_v23 = vld [vmem:[%s923_s3 + $0x28] sm:$0xff]  ;;  %v622_v25 = vld [vmem:[%s923_s3 + $0x38] sm:$0xff] }
  0xa4   :  { %v165_v2 = vpop.permute.xlu1 %164  ;;  %v117_v4 = vpop.permute.xlu0 %116 }
  0xa5   :  { %v182_v39 = vmul.f32 %v180_v15, %v165_v2  ;;  %v138_v40 = vmul.f32 %v137_v10, %v117_v4  ;;  %v277_v2 = vld [vmem:[%s923_s3 + $0x10] sm:$0xff]  ;;  %v278_v4 = vld [vmem:[%s923_s3 + $0x18] sm:$0xff] }
  0xa7   :  { %v186_v53 = vadd.f32 %v182_v39, %v143_v42  ;;  %v142_v14 = vadd.f32 %v138_v40, %v92_v43 }
  0xa8   :  { %v192_v5 = vpop.permute.xlu1 %191  ;;  %v190_v6 = vpop.permute.xlu0 %189 }
  0xa9   :  { %v194_v13 = vsel %vm193_vm3, %v190_v6, %v192_v5  ;;  %v619_v5 = vld [vmem:[%s923_s3 + $0x20] sm:$0xff]  ;;  %s710_s3 = smov [#allocation3]  }
  0xaa   :  { %v223_v3 = vrot.slane %v194_v13, %v767_v8  ;;  %669 = vmatprep.mubr.msk.f32.mxu1 %vm303_vm0, %v619_v5  ;;  %s591_s14 = sshll.u32 %s710_s3, 4  ;;  %s592_s14 = int_to_ptr.vmem [resolvable:$true] %s591_s14 }
  0xab   :  { %s683_s15 = scalar_lea.vmem %s592_s14, 16  ;;  %s687_s16 = scalar_lea.vmem %s592_s14, 32 }
  0xac   :  { %v261_v11 = vpop.permute.xlu1 %260  ;;  %v213_v12 = vpop.permute.xlu0 %212  ;;  %v227_v31 = vmul.f32 %v223_v3, %v218_v0  ;;  %p684_p0 = scmp.ne.s32.totalorder %s592_s14, %s683_s15  ;;  %p688_p1 = scmp.lt.s32.totalorder %s592_s14, %s592_s14 }
  0xad   :  { %v226_v33 = vmul.f32 %v223_v3, %v213_v12  ;;  %p689_p2 = scmp.lt.s32.totalorder %s687_s16, %s683_s15 }
  0xae   :  { %v231_v46 = vadd.f32 %v227_v31, %v188_v38 }
  0xaf   :  { %v230_v48 = vadd.f32 %v226_v33, %v187_v41  ;;  %p690_p3 = por %p689_p2, %p688_p1 }
  0xb0   :  { %v208_v17 = vpop.permute.xlu1 %207  ;;  %v160_v18 = vpop.permute.xlu0 %159 }
  0xb1   :  { %v225_v49 = vmul.f32 %v223_v3, %v208_v17  ;;  %v181_v50 = vmul.f32 %v180_v15, %v160_v18  ;;  %p691_p4 = pnand %p690_p3, %p684_p0 }
  0xb3   :  { %v229_v58 = vadd.f32 %v225_v49, %v186_v53  ;;  %v185_v59 = vadd.f32 %v181_v50, %v142_v14 }
  0xb4   :  { %v235_v28 = vpop.permute.xlu1 %234  ;;  %v233_v29 = vpop.permute.xlu0 %232 }
  0xb5   :  { %v237_v34 = vsel %vm236_vm4, %v233_v29, %v235_v28 }
  0xb6   :  { %v266_v37 = vrot.slane %v237_v34, %v767_v8 }
  0xb8   :  { %v203_v44 = vpop.permute.xlu1 %202  ;;  %v256_v45 = vpop.permute.xlu0 %255  ;;  %v270_v47 = vmul.f32 %v266_v37, %v261_v11 }
  0xb9   :  { %v269_v51 = vmul.f32 %v266_v37, %v256_v45  ;;  %v224_v54 = vmul.f32 %v223_v3, %v203_v44 }
  0xba   :  { %v274_v52 = vadd.f32 %v270_v47, %v231_v46 }
  0xbb   :  { %v273_v55 = vadd.f32 %v269_v51, %v230_v48  ;;  %v228_v62 = vadd.f32 %v224_v54, %v185_v59 }
  0xbc   :  { %v246_v56 = vpop.permute.xlu1 %245  ;;  %v251_v57 = vpop.permute.xlu0 %250  ;;  %647 = vmatprep.subr.mxu0 %v274_v52 }
  0xbd   :  { %v267_v60 = vmul.f32 %v266_v37, %v246_v56  ;;  %v268_v61 = vmul.f32 %v266_v37, %v251_v57  ;;  %648 = vmatpush3.msra.mxu0 %v274_v52 }
  0xbe   :  { %649 = vmatprep.subr.mxu0 %v273_v55 }
  0xbf   :  { %v272_v63 = vadd.f32 %v268_v61, %v229_v58  ;;  %650 = vmatpush3.msra.mxu0 %v273_v55  ;;  %v271_v0 = vadd.f32 %v267_v60, %v228_v62 }
  0xc0   :  { %v301_v6 = vpop.permute.xlu0 %300  ;;  %v296_v9 = vpop.permute.xlu1 %295 }
  0xc1   :  { %651 = vmatprep.subr.mxu0 %v272_v63 }
  0xc2   :  { %652 = vmatpush3.msra.mxu0 %v272_v63 }
  0xc3   :  { %653 = vmatprep.subr.mxu0 %v271_v0 }
  0xc4   :  { %654 = vmatpush3.msra.mxu0 %v271_v0  ;;  %v291_v13 = vpop.permute.xlu0 %290  ;;  %v286_v18 = vpop.permute.xlu1 %285 }
  0xc5   :  { %656 = vmatmul.mubr.msk.f32.vlgmr.msra.gmra.mxu0 %vm303_vm0, %v276_v1 }
  0xc6   :  { %658 = vmatprep.mubr.msk.f32.mxu0 %vm303_vm0, %v277_v2 }
  0xc8   :  { %v418_v26 = vpop.permute.xlu0 %417  ;;  %v423_v27 = vpop.permute.xlu1 %422 }
  0xc9   :  { %659 = vmatmul.mubr.msk.f32.gmra.mxu0 %vm303_vm0, %v278_v4 }
  0xcc   :  { %v428_v28 = vpop.permute.xlu0 %427  ;;  %v433_v29 = vpop.permute.xlu1 %432 }
  0xd0   :  { %v543_v34 = vpop.permute.xlu0 %542  ;;  %v548_v39 = vpop.permute.xlu1 %547 }
  0xd4   :  { %v553_v46 = vpop.permute.xlu0 %552  ;;  %v558_v49 = vpop.permute.xlu1 %557 }
  0xd8   :  { %v577_v56 = vpop.permute.xlu0 %576 }
  0xd9   :  { %v582_v58 = vrot.slane %v577_v56, %v767_v8 }
 0x185   :  { %v657_v7 = vpop.f32.mrf.mxu0 }
 0x186   :  { %v388_v16 = vadd.f32 %v657_v7, %v291_v13 }
 0x187   :  { %v382_v10 = vpop.f32.mrf.mxu0 }
 0x188   :  { %v383_v19 = vadd.f32 %v382_v10, %v286_v18  ;;  %v402_v21 = vmax.f32 %v388_v16, 0.0 }
 0x189   :  { %v660_v11 = vpop.f32.mrf.mxu0 }
 0x18a   :  { %v398_v12 = vadd.f32 %v660_v11, %v301_v6  ;;  %v401_v22 = vmax.f32 %v383_v19, 0.0 }
 0x18b   :  { %v392_v15 = vpop.f32.mrf.mxu0 }
 0x18c   :  { %v404_v3 = vmax.f32 %v398_v12, 0.0  ;;  %v393_v17 = vadd.f32 %v392_v15, %v296_v9 }
 0x18e   :  { %v403_v20 = vmax.f32 %v393_v17, 0.0  ;;  %661 = vmatprep.subr.mxu1 %v404_v3 }
 0x18f   :  { %662 = vmatpush3.msra.mxu1 %v404_v3 }
 0x190   :  { %663 = vmatprep.subr.mxu1 %v403_v20 }
 0x191   :  { %664 = vmatpush3.msra.mxu1 %v403_v20 }
 0x192   :  { %665 = vmatprep.subr.mxu1 %v402_v21 }
 0x193   :  { %666 = vmatpush3.msra.mxu1 %v402_v21 }
 0x194   :  { %667 = vmatprep.subr.mxu1 %v401_v22 }
 0x195   :  { %668 = vmatpush3.msra.mxu1 %v401_v22 }
 0x196   :  { %670 = vmatmul.mubr.msk.f32.vlgmr.msra.gmra.mxu1 %vm303_vm0, %v620_v23 }
 0x197   :  { %672 = vmatprep.mubr.msk.f32.mxu1 %vm303_vm0, %v621_v24 }
 0x19a   :  { %673 = vmatmul.mubr.msk.f32.gmra.mxu1 %vm303_vm0, %v622_v25 }
 0x256   :  { %v671_v30 = vpop.f32.mrf.mxu1 }
 0x257   :  { %v519_v31 = vadd.f32 %v671_v30, %v423_v27 }
 0x258   :  { %v513_v32 = vpop.f32.mrf.mxu1 }
 0x259   :  { %v514_v33 = vadd.f32 %v513_v32, %v418_v26  ;;  %v533_v36 = vmax.f32 %v519_v31, 0.0 }
 0x25a   :  { %v674_v35 = vpop.f32.mrf.mxu1 }
 0x25b   :  { %v532_v37 = vmax.f32 %v514_v33, 0.0  ;;  %v529_v38 = vadd.f32 %v674_v35, %v433_v29  ;;  %v561_v43 = vmul.f32 %v548_v39, %v533_v36 }
 0x25c   :  { %v523_v40 = vpop.f32.mrf.mxu1 }
 0x25d   :  { %v560_v41 = vmul.f32 %v543_v34, %v532_v37  ;;  %v524_v42 = vadd.f32 %v523_v40, %v428_v28  ;;  %v535_v44 = vmax.f32 %v529_v38, 0.0 }
 0x25f   :  { %v534_v45 = vmax.f32 %v524_v42, 0.0  ;;  %v564_v47 = vadd.f32 %v561_v43, %v560_v41  ;;  %v563_v50 = vmul.f32 %v558_v49, %v535_v44 }
 0x261   :  { %v562_v48 = vmul.f32 %v553_v46, %v534_v45 }
 0x263   :  { %v565_v51 = vadd.f32 %v564_v47, %v562_v48 }
 0x265   :  { %v566_v52 = vadd.f32 %v565_v51, %v563_v50 }
 0x267   :  { %v567_v53 = vrot.slane %v566_v52, 4 }
 0x269   :  { %v568_v14 = vadd.f32 %v567_v53, %v566_v52 }
 0x26b   :  { %v569_v54 = vrot.slane %v568_v14, 2 }
 0x26d   :  { %v570_v55 = vadd.f32 %v569_v54, %v568_v14 }
 0x26f   :  { %v571_v57 = vrot.slane %v570_v55, 1 }
 0x271   :  { %v572_v59 = vadd.f32 %v571_v57, %v570_v55 }
 0x273   :  { %v583_v60 = vadd.f32 %v582_v58, %v572_v59 }
 0x275   :  { %584 = vst [vmem:[#allocation3] sm:$0x1] %v583_v60 }
 0x276   :  { %694 = shalt.err (!%p691_p4)
}
 0x277   :  { %594 = dma.vmem_to_hbm [thread:$0]  %s592_s14, 16, %s927_s7, [#allocation4]  }
 0x278   :  { %703 = dma.done.wait [#allocation4], 16  }
 0x279   :  { %704 = vsyncadd [#allocation4], 4294967280 }
 0x27a   :  { %598 = vsyncpa [#allocation4], 1 }

</bundles_post_ra>
